<compile_context>
chip_gen: v6e
topology: v6e:2x2x1
jax: 0.10.0
libtpu: 0.0.40
codegen_flags: <defaults>
</compile_context>

<pallas_src>
import jax
import jax.numpy as jnp
from jax.experimental import pallas as pl
from jax.experimental.pallas import tpu as pltpu


def _round_up(x: int, m: int) -> int:
    return ((x + m - 1) // m) * m


def _cdiv(a: int, b: int) -> int:
    return (a + b - 1) // b


def projection_kernel(x_ref, w_ref, b_ref, o_ref, m_scr, l_scr):
    # x_ref: (tm, D) bf16    w_ref: (D, tv) bf16    b_ref: (1, tv) f32
    # o_ref: (tm, tv) out    m_scr / l_scr: (rows_per_chunk, 1) f32 scratch
    p = pl.program_id(1)        # 0 = stats pass, 1 = write pass
    j = pl.program_id(2)        # vocab tile
    ii = pl.program_id(3)       # row tile within the current row chunk
    n_j = pl.num_programs(2)
    tm = x_ref.shape[0]
    rows = pl.ds(pl.multiple_of(ii * tm, tm), tm)

    # bf16 MXU matmul, f32 accumulation; bias added in f32.
    logits = jnp.dot(x_ref[...], w_ref[...], preferred_element_type=jnp.float32)
    logits = logits + b_ref[...]

    @pl.when(p == 0)
    def _stats():
        @pl.when(j == 0)
        def _init():
            m_scr[rows, :] = jnp.full((tm, 1), -jnp.inf, m_scr.dtype)
            l_scr[rows, :] = jnp.zeros((tm, 1), l_scr.dtype)

        m_prev = m_scr[rows, :]
        m_new = jnp.maximum(m_prev, jnp.max(logits, axis=-1, keepdims=True))
        l_new = (l_scr[rows, :] * jnp.exp(m_prev - m_new)
                 + jnp.sum(jnp.exp(logits - m_new), axis=-1, keepdims=True))
        m_scr[rows, :] = m_new
        l_scr[rows, :] = l_new

        @pl.when(j == n_j - 1)
        def _finalize():
            # Fold lse = m + log(l) into the scratch once per row tile so the
            # write pass does no per-vocab-tile log/broadcast work.
            m_scr[rows, :] = m_new + jnp.log(l_new)

    @pl.when(p == 1)
    def _write():
        o_ref[...] = (logits - m_scr[rows, :]).astype(o_ref.dtype)


def _vmem_limit_bytes() -> int:
    """Per-generation scoped-VMEM limit with headroom under physical capacity."""
    try:
        cap = int(pltpu.get_tpu_info().vmem_capacity_bytes)
    except Exception:
        cap = 64 * 1024 * 1024          # conservative fallback (v7x-sized)
    return max(32 * 1024 * 1024, min(cap - (8 << 20), int(cap * 0.85)))


def _choose_tiles(M: int, D: int, V: int, out_itemsize: int, vmem_limit: int):
    """Returns (tm, n_chunks, row_tiles_per_chunk, tv)."""
    # Row tile: multiple of 16 (bf16 sublane packing); 256 matches MXU rows.
    tm = 256 if M >= 256 else _round_up(max(M, 16), 16)
    n_row_tiles = _cdiv(M, tm)
    # Row tiles per chunk: amortize each weight stream over up to ~2K rows while
    # keeping the per-chunk stat scratch tiny.
    ii = min(n_row_tiles, max(1, 2048 // tm))
    if n_row_tiles >= 2:
        ii = min(ii, _cdiv(n_row_tiles, 2))    # >=2 chunks -> both v7x cores busy
    io = _cdiv(n_row_tiles, ii)

    # Vocab tile: largest lane-dense multiple of 128 whose double-buffered
    # weight slab + output tile fits the per-generation VMEM budget.
    fixed = (2 * tm * D * 2                 # x, double buffered, bf16
             + 2 * ii * tm * 128 * 4        # m/l scratch (lane padded)
             + (6 << 20))                   # headroom
    per_tv = 4 * D + 2 * tm * out_itemsize + 64   # w (2 bufs, bf16) + out (2 bufs) + bias
    tv = max(128, (vmem_limit - fixed) // per_tv)
    tv = max(128, min((tv // 128) * 128, 8192, _round_up(V, 128)))
    return tm, io, ii, int(tv)


def prepare_projection_weights(w, b, tv: int):
    """Cast/pad the LM-head weight ONCE (call at parameter time, not per step).

    w: (d_model, vocab) f32/bf16, b: (vocab,) -> (wq bf16 (D, V_pad), b2d f32 (1, V_pad)).
    """
    D, V = w.shape
    V_pad = _cdiv(V, tv) * tv
    wq = w.astype(jnp.bfloat16)
    b2d = b.reshape(1, V).astype(jnp.float32)
    if V_pad != V:
        wq = jnp.pad(wq, ((0, 0), (0, V_pad - V)))
        # Padded vocab columns get a huge negative bias -> exp underflows to 0,
        # so they never perturb the log-softmax of the real columns.
        b2d = jnp.pad(b2d, ((0, 0), (0, V_pad - V)), constant_values=-1e30)
    return wq, b2d


def projection_layer(x, w, b, *, out_dtype=jnp.float32, tiles=None,
                     prepared_weights=None):
    """x: (B, S, D); w: (D, V); b: (V,) -> (B, S, V) log-probs (log_softmax).

    For real use, compute `tiles` via _choose_tiles and `prepared_weights` via
    prepare_projection_weights once at parameter time and pass them in, so the
    full weight is not re-cast/re-padded in HBM on every forward call.
    """
    B, S, D = x.shape
    V = w.shape[1]
    M = B * S
    out_itemsize = jnp.dtype(out_dtype).itemsize
    vmem_limit = _vmem_limit_bytes()

    if tiles is None:
        tiles = _choose_tiles(M, D, V, out_itemsize, vmem_limit)
    tm, io, ii, tv = tiles

    if prepared_weights is None:
        prepared_weights = prepare_projection_weights(w, b, tv)
    wq, b2d = prepared_weights
    V_pad = wq.shape[1]
    assert V_pad % tv == 0

    M_pad = io * ii * tm
    x2d = x.reshape(M, D).astype(jnp.bfloat16)
    if M_pad != M:
        x2d = jnp.pad(x2d, ((0, M_pad - M), (0, 0)))

    n_j = V_pad // tv
    grid = (io, 2, n_j, ii)   # row chunk (parallel), pass, vocab tile, row tile

    cost = pl.CostEstimate(
        flops=2 * 2 * M_pad * D * V_pad,                   # matmul done twice
        transcendentals=M_pad * V_pad + M_pad,             # exp (pass 0) + log
        bytes_accessed=(2 * n_j * M_pad * D * 2            # x re-streamed per (pass, vocab tile)
                        + io * 2 * D * V_pad * 2           # weight: twice per row chunk
                        + 2 * n_j * V_pad * 4              # bias
                        + M_pad * V_pad * out_itemsize),   # output
    )

    out2d = pl.pallas_call(
        projection_kernel,
        out_shape=jax.ShapeDtypeStruct((M_pad, V_pad), out_dtype),
        grid_spec=pltpu.PrefetchScalarGridSpec(
            num_scalar_prefetch=0,
            grid=grid,
            in_specs=[
                # x row tile: small (tm, D) stream on the innermost axis.
                pl.BlockSpec((tm, D), lambda o, p, j, i: (o * ii + i, 0)),
                # weight tile: independent of the inner row axis -> resident in
                # VMEM while every row tile of this chunk reuses it.
                pl.BlockSpec((D, tv), lambda o, p, j, i: (0, j)),
                pl.BlockSpec((1, tv), lambda o, p, j, i: (0, j)),
            ],
            # During the stats pass the output block index is pinned to the
            # chunk's first block, which is also the first block written in the
            # write pass -> each output tile is flushed exactly once with valid
            # data and no block index is revisited non-consecutively.
            out_specs=pl.BlockSpec((tm, tv),
                                   lambda o, p, j, i: (o * ii + i * p, j * p)),
            scratch_shapes=[
                pltpu.VMEM((ii * tm, 1), jnp.float32),   # running max -> lse
                pltpu.VMEM((ii * tm, 1), jnp.float32),   # running sum-exp
            ],
        ),
        compiler_params=pltpu.CompilerParams(
            dimension_semantics=("parallel", "arbitrary", "arbitrary", "arbitrary"),
            vmem_limit_bytes=vmem_limit,
        ),
        cost_estimate=cost,
    )(x2d, wq, b2d)

    return out2d[:M, :V].reshape(B, S, V)


def _reference(x, w, b):
    # Same bf16 rounding of the matmul inputs as the kernel (f32 accumulation).
    B, S, D = x.shape
    V = w.shape[1]
    xq = x.astype(jnp.bfloat16).astype(jnp.float32).reshape(-1, D)
    wq = w.astype(jnp.bfloat16).astype(jnp.float32)
    return jax.nn.log_softmax(xq @ wq + b, axis=-1).reshape(B, S, V)


if __name__ == "__main__":
    key = jax.random.PRNGKey(0)

    # ---- Test 1: module-sized shapes, prepare-once parameter path ----------
    batch, seq, d_model, vocab_size = 2, 8, 32, 128
    k1, k2, k3, k4, k5, k6 = jax.random.split(key, 6)

    bound = 1.0 / (d_model ** 0.5)
    w = jax.random.uniform(k2, (d_model, vocab_size), jnp.float32, -bound, bound)
    b = jax.random.uniform(k3, (vocab_size,), jnp.float32, -bound, bound)
    x = jax.random.normal(k1, (batch, seq, d_model), jnp.float32)

    tiles = _choose_tiles(batch * seq, d_model, vocab_size, 4, _vmem_limit_bytes())
    prepared = prepare_projection_weights(w, b, tiles[3])   # once, at param time
    out = projection_layer(x, w, b, tiles=tiles, prepared_weights=prepared)
    jax.block_until_ready(out)
    assert out.shape == (batch, seq, vocab_size)

    ref = _reference(x, w, b)
    assert jnp.allclose(out, ref, atol=5e-3, rtol=5e-3), float(jnp.max(jnp.abs(out - ref)))
    ref_f32 = jax.nn.log_softmax(x @ w + b, axis=-1)
    assert jnp.allclose(out, ref_f32, atol=5e-2, rtol=5e-2)
    assert jnp.allclose(jnp.exp(out).sum(-1), 1.0, atol=1e-3)

    # ---- Test 2: multi row-chunk / multi vocab-tile grid with ragged vocab --
    b2_, s2_, d2_, v2_ = 4, 96, 64, 600        # 384 rows, vocab padded 600 -> 640
    bound2 = 1.0 / (d2_ ** 0.5)
    w2 = jax.random.uniform(k5, (d2_, v2_), jnp.float32, -bound2, bound2)
    b2 = jax.random.uniform(k6, (v2_,), jnp.float32, -bound2, bound2)
    x2 = jax.random.normal(k4, (b2_, s2_, d2_), jnp.float32)

    # tm=128, 2 row chunks x 2 row tiles, tv=128 -> grid (2, 2, 5, 2).
    out2 = projection_layer(x2, w2, b2, tiles=(128, 2, 2, 128))
    jax.block_until_ready(out2)
    assert out2.shape == (b2_, s2_, v2_)

    ref2 = _reference(x2, w2, b2)
    assert jnp.allclose(out2, ref2, atol=5e-3, rtol=5e-3), float(jnp.max(jnp.abs(out2 - ref2)))
    assert jnp.allclose(jnp.exp(out2).sum(-1), 1.0, atol=1e-3)

    print("KERNEL_OK")
</pallas_src>

<mosaic_0001>
module attributes {stable_mosaic.version = 11 : i64} {
  func.func @projection_kernel(%arg0: i32, %arg1: i32, %arg2: i32, %arg3: i32, %arg4: memref<16x32xbf16, #tpu.memory_space<vmem>>, %arg5: memref<32x128xbf16, #tpu.memory_space<vmem>>, %arg6: memref<1x128xf32, #tpu.memory_space<vmem>>, %arg7: memref<16x128xf32, #tpu.memory_space<vmem>>, %arg8: memref<16x1xf32, #tpu.memory_space<vmem>>, %arg9: memref<16x1xf32, #tpu.memory_space<vmem>>) attributes {dimension_semantics = [#tpu.dimension_semantics<parallel>, #tpu.dimension_semantics<arbitrary>, #tpu.dimension_semantics<arbitrary>, #tpu.dimension_semantics<arbitrary>], iteration_bounds = array<i64: 1, 2, 1, 1>, scalar_prefetch = 0 : i64, scratch_operands = 2 : i64, tpu.core_type = #tpu.core_type<tc>, window_params = [{transform_indices = @transform_0, window_bounds = array<i64: 16, 32>}, {transform_indices = @transform_1, window_bounds = array<i64: 32, 128>}, {transform_indices = @transform_2, window_bounds = array<i64: 1, 128>}, {transform_indices = @transform_3, window_bounds = array<i64: 16, 128>}]} {
    %c16_i32 = arith.constant 16 : i32
    %0 = arith.muli %arg3, %c16_i32 : i32
    %1 = tpu.assume_multiple %0, 16 : i32
    %c0 = arith.constant 0 : index
    %c0_0 = arith.constant 0 : index
    %2 = vector.load %arg4[%c0, %c0_0] : memref<16x32xbf16, #tpu.memory_space<vmem>>, vector<16x32xbf16>
    %c0_1 = arith.constant 0 : index
    %c0_2 = arith.constant 0 : index
    %3 = vector.load %arg5[%c0_1, %c0_2] : memref<32x128xbf16, #tpu.memory_space<vmem>>, vector<32x128xbf16>
    %cst = arith.constant dense<0.000000e+00> : vector<16x128xf32>
    %4 = tpu.matmul %2, %3, %cst {dimension_numbers = #tpu.dot_dimension_numbers<[1], [0], [0], [1], [0, 0, 1, 1], [], []>} : vector<16x32xbf16>, vector<32x128xbf16>, vector<16x128xf32> -> vector<16x128xf32>
    %c0_3 = arith.constant 0 : index
    %c0_4 = arith.constant 0 : index
    %5 = vector.load %arg6[%c0_3, %c0_4] : memref<1x128xf32, #tpu.memory_space<vmem>>, vector<1x128xf32>
    %6 = vector.broadcast %5 : vector<1x128xf32> to vector<16x128xf32>
    %7 = arith.addf %4, %6 : vector<16x128xf32>
    %c0_i32 = arith.constant 0 : i32
    %8 = arith.cmpi eq, %arg1, %c0_i32 : i32
    %9 = arith.extui %8 : i1 to i32
    %c0_i32_5 = arith.constant 0 : i32
    %10 = arith.cmpi ne, %9, %c0_i32_5 : i32
    scf.if %10 {
      %c0_i32_7 = arith.constant 0 : i32
      %14 = arith.cmpi eq, %arg2, %c0_i32_7 : i32
      %15 = arith.extui %14 : i1 to i32
      %c0_i32_8 = arith.constant 0 : i32
      %16 = arith.cmpi ne, %15, %c0_i32_8 : i32
      scf.if %16 {
        %cst_17 = arith.constant 0xFF800000 : f32
        %40 = vector.broadcast %cst_17 : f32 to vector<16x1xf32>
        %41 = arith.index_cast %1 : i32 to index
        %c0_18 = arith.constant 0 : index
        %42 = vector.load %arg8[%41, %c0_18] : memref<16x1xf32, #tpu.memory_space<vmem>>, vector<16x1xf32>
        tpu.vector_store %arg8[%41, %c0_18], %40 {strides = array<i32>} : memref<16x1xf32, #tpu.memory_space<vmem>>, vector<16x1xf32>,
        %cst_19 = arith.constant 0.000000e+00 : f32
        %43 = vector.broadcast %cst_19 : f32 to vector<16x1xf32>
        %44 = arith.index_cast %1 : i32 to index
        %c0_20 = arith.constant 0 : index
        %45 = vector.load %arg9[%44, %c0_20] : memref<16x1xf32, #tpu.memory_space<vmem>>, vector<16x1xf32>
        tpu.vector_store %arg9[%44, %c0_20], %43 {strides = array<i32>} : memref<16x1xf32, #tpu.memory_space<vmem>>, vector<16x1xf32>,
      } else {
      }
      %17 = arith.index_cast %1 : i32 to index
      %c0_9 = arith.constant 0 : index
      %18 = vector.load %arg8[%17, %c0_9] : memref<16x1xf32, #tpu.memory_space<vmem>>, vector<16x1xf32>
      %cst_10 = arith.constant dense<0xFF800000> : vector<16xf32>
      %19 = vector.multi_reduction <maximumf>, %7, %cst_10 [1] : vector<16x128xf32> to vector<16xf32>
      %20 = vector.shape_cast %19 : vector<16xf32> to vector<16x1xf32>
      %21 = arith.maximumf %18, %20 : vector<16x1xf32>
      %22 = arith.index_cast %1 : i32 to index
      %c0_11 = arith.constant 0 : index
      %23 = vector.load %arg9[%22, %c0_11] : memref<16x1xf32, #tpu.memory_space<vmem>>, vector<16x1xf32>
      %24 = arith.subf %18, %21 : vector<16x1xf32>
      %25 = math.exp %24 : vector<16x1xf32>
      %26 = arith.mulf %23, %25 : vector<16x1xf32>
      %27 = vector.broadcast %21 : vector<16x1xf32> to vector<16x128xf32>
      %28 = arith.subf %7, %27 : vector<16x128xf32>
      %29 = math.exp %28 : vector<16x128xf32>
      %cst_12 = arith.constant dense<0.000000e+00> : vector<16xf32>
      %30 = vector.multi_reduction <add>, %29, %cst_12 [1] : vector<16x128xf32> to vector<16xf32>
      %31 = vector.shape_cast %30 : vector<16xf32> to vector<16x1xf32>
      %32 = arith.addf %26, %31 : vector<16x1xf32>
      %33 = arith.index_cast %1 : i32 to index
      %c0_13 = arith.constant 0 : index
      %34 = vector.load %arg8[%33, %c0_13] : memref<16x1xf32, #tpu.memory_space<vmem>>, vector<16x1xf32>
      tpu.vector_store %arg8[%33, %c0_13], %21 {strides = array<i32>} : memref<16x1xf32, #tpu.memory_space<vmem>>, vector<16x1xf32>,
      %35 = arith.index_cast %1 : i32 to index
      %c0_14 = arith.constant 0 : index
      %36 = vector.load %arg9[%35, %c0_14] : memref<16x1xf32, #tpu.memory_space<vmem>>, vector<16x1xf32>
      tpu.vector_store %arg9[%35, %c0_14], %32 {strides = array<i32>} : memref<16x1xf32, #tpu.memory_space<vmem>>, vector<16x1xf32>,
      %c0_i32_15 = arith.constant 0 : i32
      %37 = arith.cmpi eq, %arg2, %c0_i32_15 : i32
      %38 = arith.extui %37 : i1 to i32
      %c0_i32_16 = arith.constant 0 : i32
      %39 = arith.cmpi ne, %38, %c0_i32_16 : i32
      scf.if %39 {
        %40 = math.log %32 : vector<16x1xf32>
        %41 = arith.addf %21, %40 : vector<16x1xf32>
        %42 = arith.index_cast %1 : i32 to index
        %c0_17 = arith.constant 0 : index
        %43 = vector.load %arg8[%42, %c0_17] : memref<16x1xf32, #tpu.memory_space<vmem>>, vector<16x1xf32>
        tpu.vector_store %arg8[%42, %c0_17], %41 {strides = array<i32>} : memref<16x1xf32, #tpu.memory_space<vmem>>, vector<16x1xf32>,
      } else {
      }
    } else {
    }
    %c1_i32 = arith.constant 1 : i32
    %11 = arith.cmpi eq, %arg1, %c1_i32 : i32
    %12 = arith.extui %11 : i1 to i32
    %c0_i32_6 = arith.constant 0 : i32
    %13 = arith.cmpi ne, %12, %c0_i32_6 : i32
    scf.if %13 {
      %14 = arith.index_cast %1 : i32 to index
      %c0_7 = arith.constant 0 : index
      %15 = vector.load %arg8[%14, %c0_7] : memref<16x1xf32, #tpu.memory_space<vmem>>, vector<16x1xf32>
      %16 = vector.broadcast %15 : vector<16x1xf32> to vector<16x128xf32>
      %17 = arith.subf %7, %16 : vector<16x128xf32>
      %c0_8 = arith.constant 0 : index
      %c0_9 = arith.constant 0 : index
      %18 = vector.load %arg7[%c0_8, %c0_9] : memref<16x128xf32, #tpu.memory_space<vmem>>, vector<16x128xf32>
      tpu.vector_store %arg7[%c0_8, %c0_9], %17 {strides = array<i32>} : memref<16x128xf32, #tpu.memory_space<vmem>>, vector<16x128xf32>,
    } else {
    }
    return
  }
  func.func @transform_0(%arg0: i32, %arg1: i32, %arg2: i32, %arg3: i32) -> (i32, i32) {
    %c1_i32 = arith.constant 1 : i32
    %0 = arith.muli %arg0, %c1_i32 : i32
    %1 = arith.addi %0, %arg3 : i32
    %c0_i32 = arith.constant 0 : i32
    %c0_i32_0 = arith.constant 0 : i32
    return %1, %c0_i32 : i32, i32
  }
  func.func @transform_1(%arg0: i32, %arg1: i32, %arg2: i32, %arg3: i32) -> (i32, i32) {
    %c0_i32 = arith.constant 0 : i32
    %c0_i32_0 = arith.constant 0 : i32
    return %c0_i32, %arg2 : i32, i32
  }
  func.func @transform_2(%arg0: i32, %arg1: i32, %arg2: i32, %arg3: i32) -> (i32, i32) {
    %c0_i32 = arith.constant 0 : i32
    %c0_i32_0 = arith.constant 0 : i32
    return %c0_i32, %arg2 : i32, i32
  }
  func.func @transform_3(%arg0: i32, %arg1: i32, %arg2: i32, %arg3: i32) -> (i32, i32) {
    %c1_i32 = arith.constant 1 : i32
    %0 = arith.muli %arg0, %c1_i32 : i32
    %1 = arith.muli %arg3, %arg1 : i32
    %2 = arith.addi %0, %1 : i32
    %3 = arith.muli %arg2, %arg1 : i32
    %c0_i32 = arith.constant 0 : i32
    return %2, %3 : i32, i32
  }
}

</mosaic_0001>

<bundles_post_ra>
// kernel: tpu_custom_call.1
= control target key start
LH: loop header
LB: loop body
LE: loop exit
PB: predicated region body
PF: predicated region fallthrough
CT: control target
= control target key end

     0   :  { %8 = vsyncpa [#allocation5], 0  ;;  %s935_s0 = inlined_call_operand.hbm [shape: bf16[16,32], index: 0, kind: input, shape index: {}]   ;;  %s936_s1 = inlined_call_operand.hbm [shape: bf16[32,128], index: 1, kind: input, shape index: {}]   ;;  %s937_s2 = inlined_call_operand.vmem [shape: f32[1,128], index: 2, kind: input, shape index: {}]   ;;  %s938_s3 = inlined_call_operand.hbm [shape: f32[16,128], index: 3, kind: output, shape index: {}]  }
   0x1   :  { %9 = vsyncpa [#allocation8], 0 }
   0x2   :  { %10 = vsyncpa [#allocation6], 0 }
   0x3   :  { %12 = vsyncpa [#allocation6 + $0x1], 0  ;;  %s817_s12 = smov 0   ;;  %s819_s13 = smov 0  }
   0x4   :  { %s821_s14 = smov 0  }
   0x5 LB: > { %s556_s15 = sadd.s32 4294967295, %s782_s14   ;;  %s557_s16 = sadd.s32 4294967294, %s782_s14   ;;  %s782_s14 = sphi %s821_s14, %s18_s14   ;;  %s778_s13 = sphi %s819_s13, %s944_s13   ;;  %s774_s12 = sphi %s817_s12, %s943_s12  }
   0x6   : > { %s40_s17 = sadd.s32 1, %s778_s13  ;;  %p558_p0 = scmp.ge.s32.totalorder %s782_s14, 1 }
   0x7   : > { %p42_p1 = scmp.ge.s32.totalorder %s40_s17, 2  ;;  %p163_p2 = scmp.lt.s32.totalorder %s782_s14, 3 }
   0x8   : > { %p839_p3 = scmp.eq.s32.totalorder %s556_s15, 0  ;;  %s784_s20 = smov [#allocation4]  }
   0x9   : > { %s946_s17 = smov (%p42_p1, %s40_s17), 0  ;;  %p845_p4 = pnand %p558_p0, %p163_p2 }
   0xa   : > { %s179_s21 = sshll.u32 %s784_s20, 4  ;;  %s785_s23 = smov [#allocation7]   ;;  %s180_s21 = int_to_ptr.vmem [resolvable:$true] %s179_s21 }
   0xb   : > { %p599_p5 = pneg %p845_p4  ;;  %s194_s24 = sshll.u32 %s785_s23, 4  ;;  %s195_s24 = int_to_ptr.vmem [resolvable:$true] %s194_s24 }
   0xc   : > { %s683_s25 = scalar_lea.vmem %s180_s21, 128  ;;  %p691_p11 = scmp.lt.s32.totalorder %s180_s21, %s180_s21 }
   0xd   : > { %p853_p6 = pnand %p839_p3, %p599_p5  ;;  %p684_p8 = scmp.ne.s32.totalorder %s180_s21, %s683_s25 }
   0xe   : > { %p692_p12 = scmp.lt.s32.totalorder %s683_s25, %s683_s25 }
   0xf   : > { %p674_p7 = pneg %p853_p6 }
  0x10   : > { %p693_p13 = por %p692_p12, %p691_p11 }
  0x11   : > { %p686_p9 = pnand %p684_p8, %p674_p7 }
  0x13   : > { %p687_p10 = pneg %p686_p9 }
  0x15   : > { %p694_p0 = pnand %p693_p13, %p687_p10 }
  0x17   : > { %697 = shalt.err (!%p694_p0)
}
  0x18   : > { %s786_s26 = smov 64   ;;  %s787_s27 = smov 4  }
  0x19   : > { %602 = dma.hbm_to_vmem [thread:$0]  (!%p853_p6), %s935_s0, 128, %s180_s21, [#allocation5], %s786_s26, %s786_s26, %s787_s27  }
  0x1a   : > { %s709_s30 = scalar_lea.vmem %s195_s24, 256  ;;  %p717_p8 = scmp.lt.s32.totalorder %s195_s24, %s195_s24 }
  0x1b   : > { %p710_p1 = scmp.ne.s32.totalorder %s195_s24, %s709_s30  ;;  %p718_p9 = scmp.lt.s32.totalorder %s709_s30, %s709_s30 }
  0x1d   : > { %p712_p2 = pnand %p710_p1, %p674_p7  ;;  %p719_p11 = por %p718_p9, %p717_p8 }
  0x1f   : > { %p713_p5 = pneg %p712_p2 }
  0x21   : > { %p720_p10 = pnand %p719_p11, %p713_p5 }
  0x23   : > { %723 = shalt.err (!%p720_p10)
}
  0x24   : > { %605 = dma.hbm_to_vmem [thread:$0]  (!%p853_p6), %s936_s1, 256, %s195_s24, [#allocation8], %s786_s26, %s786_s26, %s787_s27  }
  0x25   : > { %216 = sbr.rel (%p845_p4) target bundleno = 852 (0x354), region = 32 }
  0x2a   : > { %761 = dma.done.wait (%p839_p3), [#allocation5], 128  }
  0x2b   : > { %763 = vsyncadd (%p839_p3), [#allocation5], 4294967168 }
  0x2c   : > { %765 = dma.done.wait (%p839_p3), [#allocation8], 256  }
  0x2d   : > { %767 = vsyncadd (%p839_p3), [#allocation8], 4294967040  ;;  %v788_v0 = vmov 0.0   ;;  %vm789_vm0 = vmmov 0   ;;  %v654_v1 = vld [vmem:[#allocation7 + $0x8] sm:$0xff]   ;;  %v655_v2 = vld [vmem:[#allocation7] sm:$0xff]  }
  0x2e   : > { %579 = vmatprep.subr.bf16.mxu0 %v788_v0  ;;  %583 = vmatprep.mubr.msk.bf16.mxu0 %vm789_vm0, %v788_v0  ;;  %v656_v3 = vld [vmem:[#allocation4] sm:$0xff]   ;;  %vm283_vm1 = vcmask 261120   ;;  %p570_p3 = scmp.ne.s32.totalorder %s774_s12, 0 }
  0x2f   : > { %580 = vmatpush3.bf16.msra.mxu0 %v654_v1  ;;  %v565_v4 = vld [vmem:[%s937_s2] ss:$0 sm:$0xff] }
  0x30   : > { %581 = vmatprep.subr.bf16.mxu0 %v788_v0 }
  0x33   : > { %582 = vmatpush3.bf16.msra.mxu0 %v655_v2 }
  0x36   : > { %584 = vmatmul.mubr.msk.bf16.vlgmr.msra.gmra.mxu0 %vm283_vm1, %v656_v3 }
  0xf6   : > { %v321_v5 = vpop.f32.mrf.mxu0 }
  0xf7   : > { %v888_v6 = vadd.f32 %v565_v4, %v321_v5 }
  0xf8   : > { %v585_v7 = vpop.f32.mrf.mxu0  ;;  %331 = sbr.rel (%p570_p3) target bundleno = 698 (0x2ba), region = 44 }
  0xfa   : > { %v324_v8 = vpop.f32.mrf.mxu0 }
  0xfb   : > { %v890_v9 = vadd.f32 %v565_v4, %v324_v8 }
  0xfc   : > { %v586_v10 = vpop.f32.mrf.mxu0 }
  0xfd   : > { %346 = vmax.xlane.f32.xlu0 %v888_v6  ;;  %vm337_vm2 = vcmask 7168   ;;  %v790_v11 = vmov -inf   ;;  %v791_v12 = vmov 0   ;;  %v792_v13 = vmov 0.0  }
  0xfe   : > { %338 = vst.msk [vmem:[#allocation2] sm:$0xff] %vm337_vm2, %v790_v11  ;;  %339 = vst.msk [vmem:[#allocation2 + $0x8] sm:$0xff] %vm337_vm2, %v790_v11  ;;  %657 = vset.pattern.permute.xlu1 %v791_v12  ;;  %658 = vset.pattern.permute.xlu0 %v791_v12 }
  0xff   : > { %341 = vst.msk [vmem:[#allocation3] sm:$0xff] %vm337_vm2, %v792_v13  ;;  %342 = vst.msk [vmem:[#allocation3 + $0x8] sm:$0xff] %vm337_vm2, %v792_v13 }
 0x101   : > { %348 = vmax.xlane.f32.xlu0 %v890_v9 }
 0x105   : > { %v344_v14 = vld [vmem:[#allocation2] sm:$0xff]  ;;  %v345_v17 = vld [vmem:[#allocation2 + $0x8] sm:$0xff] }
 0x106   : > { %v353_v33 = vld [vmem:[#allocation3] sm:$0xff]  ;;  %v354_v37 = vld [vmem:[#allocation3 + $0x8] sm:$0xff] }
 0x186   : > { %v347_v15 = vpop.xlane.xlu0 %346 }
 0x187   : > { %v350_v16 = vmax.f32 %v344_v14, %v347_v15 }
 0x189   : > { %386 = vst.msk [vmem:[#allocation2] sm:$0xff] %vm337_vm2, %v350_v16  ;;  %365 = vperm.xlu1 %657, %v350_v16   ;;  %v355_v28 = vsub.f32 %v344_v14, %v350_v16 }
 0x18a   : > { %v349_v18 = vpop.xlane.xlu0 %348 }
 0x18b   : > { %v351_v19 = vmax.f32 %v345_v17, %v349_v18  ;;  %v357_v29 = vmul.f32 1.442695, %v355_v28 }
 0x18d   : > { %387 = vst.msk [vmem:[#allocation2 + $0x8] sm:$0xff] %vm337_vm2, %v351_v19  ;;  %370 = vperm.xlu1 %657, %v351_v19   ;;  %v356_v30 = vsub.f32 %v345_v17, %v351_v19 }
 0x18f   : > { %v359_v31 = vmul.f32 1.442695, %v356_v30 }
 0x204   : > { %v366_v20 = vpop.permute.xlu1 %365 }
 0x205   : > { %v373_v21 = vsub.f32 %v888_v6, %v366_v20 }
 0x207   : > { %v375_v22 = vmul.f32 1.442695, %v373_v21 }
 0x208   : > { %v371_v23 = vpop.permute.xlu1 %370 }
 0x209   : > { %659 = vpow2.f32 %v375_v22  ;;  %v374_v24 = vsub.f32 %v890_v9, %v371_v23 }
 0x20b   : > { %v377_v25 = vmul.f32 1.442695, %v374_v24 }
 0x20d   : > { %661 = vpow2.f32 %v377_v25 }
 0x20e   : > { %663 = vpow2.f32 %v357_v29 }
 0x20f   : > { %665 = vpow2.f32 %v359_v31 }
 0x216   : > { %v660_v26 = vpop.eup %659 }
 0x217   : > { %379 = vadd.xlane.f32.xlu0 %v660_v26 }
 0x21a   : > { %v662_v27 = vpop.eup %661 }
 0x21b   : > { %381 = vadd.xlane.f32.xlu1 %v662_v27  ;;  %v664_v32 = vpop.eup %663 }
 0x21c   : > { %v361_v34 = vmul.f32 %v664_v32, %v353_v33  ;;  %v666_v35 = vpop.eup %665 }
 0x21d   : > { %v362_v39 = vmul.f32 %v666_v35, %v354_v37 }
 0x2a0   : > { %v380_v36 = vpop.xlane.xlu0 %379 }
 0x2a1   : > { %v383_v38 = vadd.f32 %v380_v36, %v361_v34 }
 0x2a3   : > { %388 = vst.msk [vmem:[#allocation3] sm:$0xff] %vm337_vm2, %v383_v38  ;;  %667 = vlog2.f32 %v383_v38 }
 0x2a4   : > { %v382_v40 = vpop.xlane.xlu1 %381 }
 0x2a5   : > { %v384_v41 = vadd.f32 %v382_v40, %v362_v39 }
 0x2a7   : > { %389 = vst.msk [vmem:[#allocation3 + $0x8] sm:$0xff] %vm337_vm2, %v384_v41  ;;  %669 = vlog2.f32 %v384_v41 }
 0x2b0   : > { %v668_v42 = vpop.eup %667 }
 0x2b1   : > { %v394_v43 = vmul.f32 0.6931472, %v668_v42 }
 0x2b3   : > { %v397_v44 = vadd.f32 %v394_v43, %v350_v16 }
 0x2b4   : > { %v670_v45 = vpop.eup %669 }
 0x2b5   : > { %399 = vst.msk [vmem:[#allocation2] sm:$0xff] %vm337_vm2, %v397_v44  ;;  %v396_v46 = vmul.f32 0.6931472, %v670_v45 }
 0x2b7   : > { %v398_v47 = vadd.f32 %v396_v46, %v351_v19 }
 0x2b9   : > { %400 = vst.msk [vmem:[#allocation2 + $0x8] sm:$0xff] %vm337_vm2, %v398_v47 }
 0x2ba PF: > { %p571_p4 = scmp.ne.s32.totalorder %s774_s12, 1 }
 0x2bc   : > { %404 = sbr.rel (%p571_p4) target bundleno = 838 (0x346), region = 56 }
 0x2c1   : > { %v406_v48 = vld [vmem:[#allocation2] sm:$0xff]  ;;  %v793_v49 = vmov 0   ;;  %v407_v50 = vld [vmem:[#allocation2 + $0x8] sm:$0xff] }
 0x2c2   : > { %671 = vset.pattern.permute.xlu0 %v793_v49 }
 0x2c3   : > { %410 = vperm.xlu0 %671, %v406_v48  }
 0x2c7   : > { %415 = vperm.xlu0 %671, %v407_v50  }
 0x33e   : > { %v411_v51 = vpop.permute.xlu0 %410 }
 0x33f   : > { %v418_v52 = vsub.f32 %v888_v6, %v411_v51 }
 0x341   : > { %420 = vst [vmem:[#allocation9] sm:$0xff] %v418_v52 }
 0x342   : > { %v416_v53 = vpop.permute.xlu0 %415 }
 0x343   : > { %v419_v54 = vsub.f32 %v890_v9, %v416_v53 }
 0x345   : > { %421 = vst [vmem:[#allocation9 + $0x8] sm:$0xff] %v419_v54 }
 0x346 PF: > { %p912_p6 = scmp.eq.s32.totalorder %s556_s15, 1  ;;  %s794_s9 = smov [#allocation9]  }
 0x347   : > { %s440_s10 = sshll.u32 %s794_s9, 4  ;;  %s441_s10 = int_to_ptr.vmem [resolvable:$true] %s440_s10 }
 0x348   : > { %s724_s11 = scalar_lea.vmem %s441_s10, 256  ;;  %s730_s12 = scalar_lea.vmem %s441_s10, 512 }
 0x349   : > { %p725_p7 = scmp.ne.s32.totalorder %s441_s10, %s724_s11  ;;  %p731_p0 = scmp.lt.s32.totalorder %s441_s10, %s441_s10 }
 0x34a   : > { %p732_p1 = scmp.lt.s32.totalorder %s730_s12, %s724_s11 }
 0x34b   : > { %p726_p12 = pnand %p725_p7, %p912_p6 }
 0x34c   : > { %p733_p2 = por %p732_p1, %p731_p0 }
 0x34d   : > { %p727_p13 = pneg %p726_p12 }
 0x34f   : > { %p734_p5 = pnand %p733_p2, %p727_p13 }
 0x351   : > { %737 = shalt.err (!%p734_p5)
}
 0x352   : > { %s795_s18 = smov 128   ;;  %s796_s15 = smov 8  }
 0x353   : > { %596 = dma.vmem_to_hbm [thread:$0]  (%p912_p6), %s441_s10, 256, %s938_s3, [#allocation6], %s795_s18, %s795_s18, %s796_s15  }
 0x354 PF: > { %p615_p8 = scmp.ge.s32.totalorder %s782_s14, 2  ;;  %p616_p9 = scmp.eq.s32.totalorder %s557_s16, 1 }
 0x356   : > { %p607_p11 = pnand %p616_p9, %p615_p8 }
 0x358   : > { %p608_p10 = pneg %p607_p11 }
 0x35a   : > { %769 = dma.done.wait (%p608_p10), [#allocation6], 256  }
 0x35b   : > { %771 = vsyncadd (%p608_p10), [#allocation6], 4294967040  ;;  %s18_s14 = sadd.s32 1, %s782_s14   ;;  %s943_s12 = smov %s778_s13 }
 0x35c   : > { %p15_p3 = scmp.ge.s32.totalorder %s18_s14, 4   ;;  %s944_s13 = smov %s946_s17 }
 0x35e   :  { %17 = sbr.rel (!%p15_p3) target bundleno = 5 (0x5), region = 99 }
 0x363   :  { %461 = vsyncpa [#allocation5], 1 }
 0x364   :  { %463 = vsyncpa [#allocation5 + $0x1], 1 }
 0x365   :  { %464 = vsyncpa [#allocation8], 1 }
 0x366   :  { %465 = vsyncpa [#allocation6], 1 }
 0x367   :  { %467 = vsyncpa [#allocation6 + $0x1], 1 }

</bundles_post_ra>
